<compile_context>
chip_gen: v7x
topology: tpu7x:2x2x1
jax: 0.10.0
libtpu: 0.0.40
codegen_flags: <defaults>
</compile_context>

<pallas_src>
import functools

import jax
import jax.numpy as jnp
from jax.experimental import pallas as pl
from jax.experimental.pallas import tpu as pltpu


def _sage_kernel(mask_ref, invdeg_ref, x_ref, *rest, plans, tile_rows, compute_dtype):
    """One grid step = (layer l, row tile r) of the fused SAGE-mean stack.

    refs:
      mask_ref   [tm, N]   int8 0/1 adjacency row tile of layer l
      invdeg_ref [tm, 1]   f32 per-row 1/degree of layer l
      x_ref      [N, F0]   input features (resident)
      rest: per-layer (w_self [Fin,Fout], w_neigh [Fin,Fout], bias [1,Fout]) ...,
            o_ref [N, F_last] (resident output), h_a / h_b [N, hid] VMEM scratch.
    """
    num_layers = len(plans)
    w_refs = rest[:3 * num_layers]
    o_ref = rest[3 * num_layers]
    h_scratch = rest[3 * num_layers + 1:]          # (h_a, h_b) ping-pong buffers

    l = pl.program_id(0)                           # layer axis (outer, serial)
    r = pl.program_id(1)                           # row-tile axis (inner)
    tm = tile_rows
    row0 = pl.multiple_of(r * tm, tm)
    cd = compute_dtype

    # 0/1 mask -> MXU operand dtype; row normalization applied in f32 epilogue.
    a = mask_ref[...].astype(jnp.float32).astype(cd)    # [tm, N]
    inv_deg = invdeg_ref[...]                            # [tm, 1] f32

    for li, plan in enumerate(plans):
        @pl.when(l == li)
        def _(li=li, plan=plan):
            w_self = w_refs[3 * li][...]
            w_neigh = w_refs[3 * li + 1][...]
            bias = w_refs[3 * li + 2][...]

            src = x_ref if li == 0 else h_scratch[(li - 1) % 2]
            h_all = src[...].astype(cd)                       # [N, Fin] (all rows)
            h_rows = src[pl.ds(row0, tm), :].astype(cd)       # [tm, Fin] (this tile)

            out = jnp.dot(h_rows, w_self, preferred_element_type=jnp.float32)
            if plan == "agg_first":                           # Fout >= Fin
                ah = jnp.dot(a, h_all, preferred_element_type=jnp.float32) * inv_deg
                out = out + jnp.dot(ah.astype(cd), w_neigh,
                                    preferred_element_type=jnp.float32)
            else:                                             # Fout < Fin: reassociate
                hn = jnp.dot(h_all, w_neigh,
                             preferred_element_type=jnp.float32).astype(cd)
                out = out + jnp.dot(a, hn, preferred_element_type=jnp.float32) * inv_deg
            out = out + bias

            if li != num_layers - 1:
                out = jnp.maximum(out, 0.0)   # ReLU; Dropout(0.5) eval -> identity
                h_scratch[li % 2][pl.ds(row0, tm), :] = out
            else:
                o_ref[pl.ds(row0, tm), :] = out.astype(o_ref.dtype)


def sage_forward(adjs, x, params, *, compute_dtype=jnp.bfloat16, tile_rows=None):
    """Fused multi-layer GraphSAGE('mean') forward as a single pallas_call.

    adjs:   list (one per layer) of dense 0/1 adjacency matrices [N, N]
            (self-loops recommended so every row has degree >= 1).
    x:      [N, in_size] node features (f32).
    params: list of dicts with 'w_self' [Fin,Fout], 'w_neigh' [Fin,Fout], 'bias' [Fout].
    """
    n, f0 = x.shape
    num_layers = len(params)
    assert len(adjs) == num_layers

    # Pack adjacency: int8 0/1 mask + per-row 1/deg (f32). Shrinks the dominant
    # HBM stream and keeps the mean normalization exact in f32.
    mask = jnp.stack([a.astype(jnp.int8) for a in adjs])                      # [L,N,N]
    deg = jnp.stack([a.astype(jnp.float32).sum(axis=1, keepdims=True) for a in adjs])
    inv_deg = 1.0 / jnp.maximum(deg, 1.0)                                     # [L,N,1]

    if tile_rows is None:
        tile_rows = next((t for t in (512, 256, 128) if n % t == 0), n)
    tm = tile_rows
    assert n % tm == 0 and (tm % 8 == 0 or tm == n)
    num_row_tiles = n // tm

    plans, weight_args, inter_dims = [], [], []
    fin = f0
    flops = 0
    for p in params:
        fi, fo = p["w_self"].shape
        assert fi == fin
        plans.append("agg_first" if fo >= fi else "reassoc")
        weight_args += [
            p["w_self"].astype(compute_dtype),
            p["w_neigh"].astype(compute_dtype),
            p["bias"].reshape(1, fo).astype(jnp.float32),
        ]
        if plans[-1] == "agg_first":
            flops += 2 * n * n * fi + 4 * n * fi * fo + n * fo
        else:
            flops += 2 * n * n * fo + 2 * (num_row_tiles + 1) * n * fi * fo + n * fo
        inter_dims.append(fo)
        fin = fo
    out_size = fin
    hid = inter_dims[0] if num_layers > 1 else out_size
    assert all(d == hid for d in inter_dims[:-1]), "intermediate widths must match"

    inputs = [mask, inv_deg, x.astype(jnp.float32)] + weight_args

    in_specs = [
        pl.BlockSpec((None, tm, n), lambda l, r: (l, r, 0)),   # A mask row tile
        pl.BlockSpec((None, tm, 1), lambda l, r: (l, r, 0)),   # 1/deg row tile
        pl.BlockSpec((n, f0), lambda l, r: (0, 0)),            # x: fetched once, resident
    ] + [pl.BlockSpec(w.shape, lambda l, r: (0, 0)) for w in weight_args]
    # Output stays resident in VMEM for the whole grid; written once by the
    # last layer's row tiles, copied back to HBM at grid end.
    out_specs = pl.BlockSpec((n, out_size), lambda l, r: (0, 0))

    scratch_shapes = [pltpu.VMEM((n, hid), jnp.float32),
                      pltpu.VMEM((n, hid), jnp.float32)]

    bytes_accessed = (sum(int(a.size) * a.dtype.itemsize for a in inputs)
                      + n * out_size * 4)

    # Explicit VMEM budget (re-derived for v7x's 64 MiB physical per TensorCore).
    cd_bytes = jnp.dtype(compute_dtype).itemsize
    vmem_needed = (
        2 * tm * n * 1                                     # double-buffered mask tiles
        + 2 * tm * 4                                       # double-buffered 1/deg tiles
        + n * f0 * 4                                       # resident x
        + sum(int(w.size) * w.dtype.itemsize for w in weight_args)
        + n * out_size * 4                                 # resident output
        + 2 * n * hid * 4                                  # H ping-pong scratch
        + 2 * tm * n * cd_bytes + 4 * n * hid * 4          # in-kernel temporaries (rough)
    )
    vmem_limit = int(min(max(4 * vmem_needed, 16 << 20), 64 << 20))

    kernel = functools.partial(
        _sage_kernel, plans=tuple(plans), tile_rows=tm, compute_dtype=compute_dtype)
    return pl.pallas_call(
        kernel,
        out_shape=jax.ShapeDtypeStruct((n, out_size), jnp.float32),
        grid=(num_layers, num_row_tiles),
        in_specs=in_specs,
        out_specs=out_specs,
        scratch_shapes=scratch_shapes,
        compiler_params=pltpu.CompilerParams(
            dimension_semantics=("arbitrary", "arbitrary"),
            vmem_limit_bytes=vmem_limit,
        ),
        cost_estimate=pl.CostEstimate(
            flops=int(flops), transcendentals=0, bytes_accessed=int(bytes_accessed)),
    )(*inputs)


def init_sage_params(key, in_size, hid_size, out_size):
    """Deterministic parameter init for the 3 SAGE layers."""
    sizes = [(in_size, hid_size), (hid_size, hid_size), (hid_size, out_size)]
    params = []
    for i, (fin, fout) in enumerate(sizes):
        k1, k2, k3, key = jax.random.split(jax.random.fold_in(key, i), 4)
        scale = 1.0 / jnp.sqrt(jnp.float32(fin))
        params.append(dict(
            w_self=jax.random.uniform(k1, (fin, fout), jnp.float32, -scale, scale),
            w_neigh=jax.random.uniform(k2, (fin, fout), jnp.float32, -scale, scale),
            bias=jax.random.uniform(k3, (fout,), jnp.float32, -scale, scale),
        ))
    return params


def make_adjacency(key, n, p_edge=0.2):
    """Random directed 0/1 graph with self-loops (every row has degree >= 1)."""
    adj = (jax.random.uniform(key, (n, n)) < p_edge).astype(jnp.float32)
    return jnp.maximum(adj, jnp.eye(n, dtype=jnp.float32))


def reference_forward(adjs, x, params):
    """Pure-JAX f32 reference matching the PyTorch module's math (eval mode)."""
    h = x
    for l, (adj, p) in enumerate(zip(adjs, params)):
        a = adj / adj.sum(axis=1, keepdims=True)      # mean aggregation
        out = h @ p["w_self"] + (a @ h) @ p["w_neigh"] + p["bias"]
        if l != len(params) - 1:
            out = jnp.maximum(out, 0.0)               # ReLU; Dropout eval -> identity
        h = out
    return h


if __name__ == "__main__":
    key = jax.random.PRNGKey(0)
    n_nodes, in_size, hid_size, out_size = 64, 16, 32, 8

    kx, kp, kb0, kb1, kb2 = jax.random.split(key, 5)
    x = jax.random.normal(kx, (n_nodes, in_size), jnp.float32)
    params = init_sage_params(kp, in_size, hid_size, out_size)
    adjs = [make_adjacency(k, n_nodes) for k in (kb0, kb1, kb2)]

    # f32 path: tight-semantics check against the pure-JAX reference.
    out_f32 = sage_forward(adjs, x, params, compute_dtype=jnp.float32)
    # bf16-MXU path (default): f32 accumulation, looser tolerance.
    out_bf16 = sage_forward(adjs, x, params, compute_dtype=jnp.bfloat16)
    out_f32, out_bf16 = jax.block_until_ready((out_f32, out_bf16))

    ref = reference_forward(adjs, x, params)
    assert out_f32.shape == (n_nodes, out_size), out_f32.shape
    assert out_bf16.shape == (n_nodes, out_size), out_bf16.shape
    assert jnp.allclose(out_f32, ref, atol=1e-3, rtol=1e-3), "f32 mismatch vs reference"
    assert jnp.allclose(out_bf16, ref, atol=1e-1, rtol=1e-1), "bf16 mismatch vs reference"

    print("KERNEL_OK")
</pallas_src>

<mosaic_0001>
module attributes {stable_mosaic.version = 11 : i64} {
  func.func @_sage_kernel(%arg0: i32, %arg1: i32, %arg2: memref<1x64x64xi8, #tpu.memory_space<vmem>>, %arg3: memref<1x64x1xf32, #tpu.memory_space<vmem>>, %arg4: memref<64x16xf32, #tpu.memory_space<vmem>>, %arg5: memref<16x32xf32, #tpu.memory_space<vmem>>, %arg6: memref<16x32xf32, #tpu.memory_space<vmem>>, %arg7: memref<1x32xf32, #tpu.memory_space<vmem>>, %arg8: memref<32x32xf32, #tpu.memory_space<vmem>>, %arg9: memref<32x32xf32, #tpu.memory_space<vmem>>, %arg10: memref<1x32xf32, #tpu.memory_space<vmem>>, %arg11: memref<32x8xf32, #tpu.memory_space<vmem>>, %arg12: memref<32x8xf32, #tpu.memory_space<vmem>>, %arg13: memref<1x8xf32, #tpu.memory_space<vmem>>, %arg14: memref<64x8xf32, #tpu.memory_space<vmem>>, %arg15: memref<64x32xf32, #tpu.memory_space<vmem>>, %arg16: memref<64x32xf32, #tpu.memory_space<vmem>>) attributes {dimension_semantics = [#tpu.dimension_semantics<arbitrary>, #tpu.dimension_semantics<arbitrary>], iteration_bounds = array<i64: 3, 1>, scalar_prefetch = 0 : i64, scratch_operands = 2 : i64, tpu.core_type = #tpu.core_type<tc>, window_params = [{transform_indices = @transform_0, window_bounds = array<i64: 1, 64, 64>}, {transform_indices = @transform_1, window_bounds = array<i64: 1, 64, 1>}, {pipeline_mode = #tpu.pipeline_mode<synchronous>, transform_indices = @transform_2, window_bounds = array<i64: 64, 16>}, {pipeline_mode = #tpu.pipeline_mode<synchronous>, transform_indices = @transform_3, window_bounds = array<i64: 16, 32>}, {pipeline_mode = #tpu.pipeline_mode<synchronous>, transform_indices = @transform_4, window_bounds = array<i64: 16, 32>}, {pipeline_mode = #tpu.pipeline_mode<synchronous>, transform_indices = @transform_5, window_bounds = array<i64: 1, 32>}, {pipeline_mode = #tpu.pipeline_mode<synchronous>, transform_indices = @transform_6, window_bounds = array<i64: 32, 32>}, {pipeline_mode = #tpu.pipeline_mode<synchronous>, transform_indices = @transform_7, window_bounds = array<i64: 32, 32>}, {pipeline_mode = #tpu.pipeline_mode<synchronous>, transform_indices = @transform_8, window_bounds = array<i64: 1, 32>}, {pipeline_mode = #tpu.pipeline_mode<synchronous>, transform_indices = @transform_9, window_bounds = array<i64: 32, 8>}, {pipeline_mode = #tpu.pipeline_mode<synchronous>, transform_indices = @transform_10, window_bounds = array<i64: 32, 8>}, {pipeline_mode = #tpu.pipeline_mode<synchronous>, transform_indices = @transform_11, window_bounds = array<i64: 1, 8>}, {pipeline_mode = #tpu.pipeline_mode<synchronous>, transform_indices = @transform_12, window_bounds = array<i64: 64, 8>}]} {
    %c64_i32 = arith.constant 64 : i32
    %0 = arith.muli %arg1, %c64_i32 : i32
    %1 = tpu.assume_multiple %0, 64 : i32
    %c0 = arith.constant 0 : index
    %c0_0 = arith.constant 0 : index
    %c0_1 = arith.constant 0 : index
    %2 = vector.load %arg2[%c0, %c0_0, %c0_1] : memref<1x64x64xi8, #tpu.memory_space<vmem>>, vector<1x64x64xi8>
    %3 = vector.shape_cast %2 : vector<1x64x64xi8> to vector<64x64xi8>
    %4 = arith.sitofp %3 : vector<64x64xi8> to vector<64x64xf32>
    %c0_2 = arith.constant 0 : index
    %c0_3 = arith.constant 0 : index
    %c0_4 = arith.constant 0 : index
    %5 = vector.load %arg3[%c0_2, %c0_3, %c0_4] : memref<1x64x1xf32, #tpu.memory_space<vmem>>, vector<1x64x1xf32>
    %6 = vector.shape_cast %5 : vector<1x64x1xf32> to vector<64x1xf32>
    %c0_i32 = arith.constant 0 : i32
    %7 = arith.cmpi eq, %arg0, %c0_i32 : i32
    %8 = arith.extui %7 : i1 to i32
    %c0_i32_5 = arith.constant 0 : i32
    %9 = arith.cmpi ne, %8, %c0_i32_5 : i32
    scf.if %9 {
      %c0_8 = arith.constant 0 : index
      %c0_9 = arith.constant 0 : index
      %16 = vector.load %arg5[%c0_8, %c0_9] : memref<16x32xf32, #tpu.memory_space<vmem>>, vector<16x32xf32>
      %c0_10 = arith.constant 0 : index
      %c0_11 = arith.constant 0 : index
      %17 = vector.load %arg6[%c0_10, %c0_11] : memref<16x32xf32, #tpu.memory_space<vmem>>, vector<16x32xf32>
      %c0_12 = arith.constant 0 : index
      %c0_13 = arith.constant 0 : index
      %18 = vector.load %arg7[%c0_12, %c0_13] : memref<1x32xf32, #tpu.memory_space<vmem>>, vector<1x32xf32>
      %c0_14 = arith.constant 0 : index
      %c0_15 = arith.constant 0 : index
      %19 = vector.load %arg4[%c0_14, %c0_15] : memref<64x16xf32, #tpu.memory_space<vmem>>, vector<64x16xf32>
      %20 = arith.index_cast %1 : i32 to index
      %c0_16 = arith.constant 0 : index
      %21 = vector.load %arg4[%20, %c0_16] : memref<64x16xf32, #tpu.memory_space<vmem>>, vector<64x16xf32>
      %cst = arith.constant dense<0.000000e+00> : vector<64x32xf32>
      %22 = tpu.matmul %21, %16, %cst {dimension_numbers = #tpu.dot_dimension_numbers<[1], [0], [0], [1], [0, 0, 1, 1], [], []>} : vector<64x16xf32>, vector<16x32xf32>, vector<64x32xf32> -> vector<64x32xf32>
      %cst_17 = arith.constant dense<0.000000e+00> : vector<64x16xf32>
      %23 = tpu.matmul %4, %19, %cst_17 {dimension_numbers = #tpu.dot_dimension_numbers<[1], [0], [0], [1], [0, 0, 1, 1], [], []>} : vector<64x64xf32>, vector<64x16xf32>, vector<64x16xf32> -> vector<64x16xf32>
      %24 = vector.broadcast %6 : vector<64x1xf32> to vector<64x16xf32>
      %25 = arith.mulf %23, %24 : vector<64x16xf32>
      %cst_18 = arith.constant dense<0.000000e+00> : vector<64x32xf32>
      %26 = tpu.matmul %25, %17, %cst_18 {dimension_numbers = #tpu.dot_dimension_numbers<[1], [0], [0], [1], [0, 0, 1, 1], [], []>} : vector<64x16xf32>, vector<16x32xf32>, vector<64x32xf32> -> vector<64x32xf32>
      %27 = arith.addf %22, %26 : vector<64x32xf32>
      %28 = vector.broadcast %18 : vector<1x32xf32> to vector<64x32xf32>
      %29 = arith.addf %27, %28 : vector<64x32xf32>
      %cst_19 = arith.constant 0.000000e+00 : f32
      %30 = vector.broadcast %cst_19 : f32 to vector<64x32xf32>
      %31 = arith.maximumf %29, %30 : vector<64x32xf32>
      %32 = arith.index_cast %1 : i32 to index
      %c0_20 = arith.constant 0 : index
      %33 = vector.load %arg15[%32, %c0_20] : memref<64x32xf32, #tpu.memory_space<vmem>>, vector<64x32xf32>
      tpu.vector_store %arg15[%32, %c0_20], %31 {strides = array<i32>} : memref<64x32xf32, #tpu.memory_space<vmem>>, vector<64x32xf32>,
    } else {
    }
    %c1_i32 = arith.constant 1 : i32
    %10 = arith.cmpi eq, %arg0, %c1_i32 : i32
    %11 = arith.extui %10 : i1 to i32
    %c0_i32_6 = arith.constant 0 : i32
    %12 = arith.cmpi ne, %11, %c0_i32_6 : i32
    scf.if %12 {
      %c0_8 = arith.constant 0 : index
      %c0_9 = arith.constant 0 : index
      %16 = vector.load %arg8[%c0_8, %c0_9] : memref<32x32xf32, #tpu.memory_space<vmem>>, vector<32x32xf32>
      %c0_10 = arith.constant 0 : index
      %c0_11 = arith.constant 0 : index
      %17 = vector.load %arg9[%c0_10, %c0_11] : memref<32x32xf32, #tpu.memory_space<vmem>>, vector<32x32xf32>
      %c0_12 = arith.constant 0 : index
      %c0_13 = arith.constant 0 : index
      %18 = vector.load %arg10[%c0_12, %c0_13] : memref<1x32xf32, #tpu.memory_space<vmem>>, vector<1x32xf32>
      %c0_14 = arith.constant 0 : index
      %c0_15 = arith.constant 0 : index
      %19 = vector.load %arg15[%c0_14, %c0_15] : memref<64x32xf32, #tpu.memory_space<vmem>>, vector<64x32xf32>
      %20 = arith.index_cast %1 : i32 to index
      %c0_16 = arith.constant 0 : index
      %21 = vector.load %arg15[%20, %c0_16] : memref<64x32xf32, #tpu.memory_space<vmem>>, vector<64x32xf32>
      %cst = arith.constant dense<0.000000e+00> : vector<64x32xf32>
      %22 = tpu.matmul %21, %16, %cst {dimension_numbers = #tpu.dot_dimension_numbers<[1], [0], [0], [1], [0, 0, 1, 1], [], []>} : vector<64x32xf32>, vector<32x32xf32>, vector<64x32xf32> -> vector<64x32xf32>
      %cst_17 = arith.constant dense<0.000000e+00> : vector<64x32xf32>
      %23 = tpu.matmul %4, %19, %cst_17 {dimension_numbers = #tpu.dot_dimension_numbers<[1], [0], [0], [1], [0, 0, 1, 1], [], []>} : vector<64x64xf32>, vector<64x32xf32>, vector<64x32xf32> -> vector<64x32xf32>
      %24 = vector.broadcast %6 : vector<64x1xf32> to vector<64x32xf32>
      %25 = arith.mulf %23, %24 : vector<64x32xf32>
      %cst_18 = arith.constant dense<0.000000e+00> : vector<64x32xf32>
      %26 = tpu.matmul %25, %17, %cst_18 {dimension_numbers = #tpu.dot_dimension_numbers<[1], [0], [0], [1], [0, 0, 1, 1], [], []>} : vector<64x32xf32>, vector<32x32xf32>, vector<64x32xf32> -> vector<64x32xf32>
      %27 = arith.addf %22, %26 : vector<64x32xf32>
      %28 = vector.broadcast %18 : vector<1x32xf32> to vector<64x32xf32>
      %29 = arith.addf %27, %28 : vector<64x32xf32>
      %cst_19 = arith.constant 0.000000e+00 : f32
      %30 = vector.broadcast %cst_19 : f32 to vector<64x32xf32>
      %31 = arith.maximumf %29, %30 : vector<64x32xf32>
      %32 = arith.index_cast %1 : i32 to index
      %c0_20 = arith.constant 0 : index
      %33 = vector.load %arg16[%32, %c0_20] : memref<64x32xf32, #tpu.memory_space<vmem>>, vector<64x32xf32>
      tpu.vector_store %arg16[%32, %c0_20], %31 {strides = array<i32>} : memref<64x32xf32, #tpu.memory_space<vmem>>, vector<64x32xf32>,
    } else {
    }
    %c2_i32 = arith.constant 2 : i32
    %13 = arith.cmpi eq, %arg0, %c2_i32 : i32
    %14 = arith.extui %13 : i1 to i32
    %c0_i32_7 = arith.constant 0 : i32
    %15 = arith.cmpi ne, %14, %c0_i32_7 : i32
    scf.if %15 {
      %c0_8 = arith.constant 0 : index
      %c0_9 = arith.constant 0 : index
      %16 = vector.load %arg11[%c0_8, %c0_9] : memref<32x8xf32, #tpu.memory_space<vmem>>, vector<32x8xf32>
      %c0_10 = arith.constant 0 : index
      %c0_11 = arith.constant 0 : index
      %17 = vector.load %arg12[%c0_10, %c0_11] : memref<32x8xf32, #tpu.memory_space<vmem>>, vector<32x8xf32>
      %c0_12 = arith.constant 0 : index
      %c0_13 = arith.constant 0 : index
      %18 = vector.load %arg13[%c0_12, %c0_13] : memref<1x8xf32, #tpu.memory_space<vmem>>, vector<1x8xf32>
      %c0_14 = arith.constant 0 : index
      %c0_15 = arith.constant 0 : index
      %19 = vector.load %arg16[%c0_14, %c0_15] : memref<64x32xf32, #tpu.memory_space<vmem>>, vector<64x32xf32>
      %20 = arith.index_cast %1 : i32 to index
      %c0_16 = arith.constant 0 : index
      %21 = vector.load %arg16[%20, %c0_16] : memref<64x32xf32, #tpu.memory_space<vmem>>, vector<64x32xf32>
      %cst = arith.constant dense<0.000000e+00> : vector<64x8xf32>
      %22 = tpu.matmul %21, %16, %cst {dimension_numbers = #tpu.dot_dimension_numbers<[1], [0], [0], [1], [0, 0, 1, 1], [], []>} : vector<64x32xf32>, vector<32x8xf32>, vector<64x8xf32> -> vector<64x8xf32>
      %cst_17 = arith.constant dense<0.000000e+00> : vector<64x8xf32>
      %23 = tpu.matmul %19, %17, %cst_17 {dimension_numbers = #tpu.dot_dimension_numbers<[1], [0], [0], [1], [0, 0, 1, 1], [], []>} : vector<64x32xf32>, vector<32x8xf32>, vector<64x8xf32> -> vector<64x8xf32>
      %cst_18 = arith.constant dense<0.000000e+00> : vector<64x8xf32>
      %24 = tpu.matmul %4, %23, %cst_18 {dimension_numbers = #tpu.dot_dimension_numbers<[1], [0], [0], [1], [0, 0, 1, 1], [], []>} : vector<64x64xf32>, vector<64x8xf32>, vector<64x8xf32> -> vector<64x8xf32>
      %25 = vector.broadcast %6 : vector<64x1xf32> to vector<64x8xf32>
      %26 = arith.mulf %24, %25 : vector<64x8xf32>
      %27 = arith.addf %22, %26 : vector<64x8xf32>
      %28 = vector.broadcast %18 : vector<1x8xf32> to vector<64x8xf32>
      %29 = arith.addf %27, %28 : vector<64x8xf32>
      %30 = arith.index_cast %1 : i32 to index
      %c0_19 = arith.constant 0 : index
      %31 = vector.load %arg14[%30, %c0_19] : memref<64x8xf32, #tpu.memory_space<vmem>>, vector<64x8xf32>
      tpu.vector_store %arg14[%30, %c0_19], %29 {strides = array<i32>} : memref<64x8xf32, #tpu.memory_space<vmem>>, vector<64x8xf32>,
    } else {
    }
    return
  }
  func.func @transform_0(%arg0: i32, %arg1: i32) -> (i32, i32, i32) {
    %c0_i32 = arith.constant 0 : i32
    %c0_i32_0 = arith.constant 0 : i32
    return %arg0, %arg1, %c0_i32 : i32, i32, i32
  }
  func.func @transform_1(%arg0: i32, %arg1: i32) -> (i32, i32, i32) {
    %c0_i32 = arith.constant 0 : i32
    %c0_i32_0 = arith.constant 0 : i32
    return %arg0, %arg1, %c0_i32 : i32, i32, i32
  }
  func.func @transform_2(%arg0: i32, %arg1: i32) -> (i32, i32) {
    %c0_i32 = arith.constant 0 : i32
    %c0_i32_0 = arith.constant 0 : i32
    %c0_i32_1 = arith.constant 0 : i32
    return %c0_i32, %c0_i32_0 : i32, i32
  }
  func.func @transform_3(%arg0: i32, %arg1: i32) -> (i32, i32) {
    %c0_i32 = arith.constant 0 : i32
    %c0_i32_0 = arith.constant 0 : i32
    %c0_i32_1 = arith.constant 0 : i32
    return %c0_i32, %c0_i32_0 : i32, i32
  }
  func.func @transform_4(%arg0: i32, %arg1: i32) -> (i32, i32) {
    %c0_i32 = arith.constant 0 : i32
    %c0_i32_0 = arith.constant 0 : i32
    %c0_i32_1 = arith.constant 0 : i32
    return %c0_i32, %c0_i32_0 : i32, i32
  }
  func.func @transform_5(%arg0: i32, %arg1: i32) -> (i32, i32) {
    %c0_i32 = arith.constant 0 : i32
    %c0_i32_0 = arith.constant 0 : i32
    %c0_i32_1 = arith.constant 0 : i32
    return %c0_i32, %c0_i32_0 : i32, i32
  }
  func.func @transform_6(%arg0: i32, %arg1: i32) -> (i32, i32) {
    %c0_i32 = arith.constant 0 : i32
    %c0_i32_0 = arith.constant 0 : i32
    %c0_i32_1 = arith.constant 0 : i32
    return %c0_i32, %c0_i32_0 : i32, i32
  }
  func.func @transform_7(%arg0: i32, %arg1: i32) -> (i32, i32) {
    %c0_i32 = arith.constant 0 : i32
    %c0_i32_0 = arith.constant 0 : i32
    %c0_i32_1 = arith.constant 0 : i32
    return %c0_i32, %c0_i32_0 : i32, i32
  }
  func.func @transform_8(%arg0: i32, %arg1: i32) -> (i32, i32) {
    %c0_i32 = arith.constant 0 : i32
    %c0_i32_0 = arith.constant 0 : i32
    %c0_i32_1 = arith.constant 0 : i32
    return %c0_i32, %c0_i32_0 : i32, i32
  }
  func.func @transform_9(%arg0: i32, %arg1: i32) -> (i32, i32) {
    %c0_i32 = arith.constant 0 : i32
    %c0_i32_0 = arith.constant 0 : i32
    %c0_i32_1 = arith.constant 0 : i32
    return %c0_i32, %c0_i32_0 : i32, i32
  }
  func.func @transform_10(%arg0: i32, %arg1: i32) -> (i32, i32) {
    %c0_i32 = arith.constant 0 : i32
    %c0_i32_0 = arith.constant 0 : i32
    %c0_i32_1 = arith.constant 0 : i32
    return %c0_i32, %c0_i32_0 : i32, i32
  }
  func.func @transform_11(%arg0: i32, %arg1: i32) -> (i32, i32) {
    %c0_i32 = arith.constant 0 : i32
    %c0_i32_0 = arith.constant 0 : i32
    %c0_i32_1 = arith.constant 0 : i32
    return %c0_i32, %c0_i32_0 : i32, i32
  }
  func.func @transform_12(%arg0: i32, %arg1: i32) -> (i32, i32) {
    %c0_i32 = arith.constant 0 : i32
    %c0_i32_0 = arith.constant 0 : i32
    %c0_i32_1 = arith.constant 0 : i32
    return %c0_i32, %c0_i32_0 : i32, i32
  }
}

</mosaic_0001>

<bundles_post_ra>
// kernel: tpu_custom_call.1
= control target key start
LH: loop header
LB: loop body
LE: loop exit
PB: predicated region body
PF: predicated region fallthrough
CT: control target
= control target key end

     0   :  { %s2685_s21 = smov 0   ;;  %s2687_s22 = smov 0   ;;  %s3090_s0 = inlined_call_operand.vmem [shape: s8[3,64,64], index: 0, kind: input, shape index: {}]   ;;  %s3091_s1 = inlined_call_operand.vmem [shape: f32[3,64,1], index: 1, kind: input, shape index: {}]   ;;  %s3092_s2 = inlined_call_operand.vmem [shape: f32[64,16], index: 2, kind: input, shape index: {}]   ;;  %s3093_s3 = inlined_call_operand.vmem [shape: f32[16,32], index: 3, kind: input, shape index: {}]   ;;  %s3094_s4 = inlined_call_operand.vmem [shape: f32[16,32], index: 4, kind: input, shape index: {}]   ;;  %s3095_s5 = inlined_call_operand.vmem [shape: f32[1,32], index: 5, kind: input, shape index: {}]   ;;  %s3096_s6 = inlined_call_operand.vmem [shape: f32[32,32], index: 6, kind: input, shape index: {}]   ;;  %s3097_s7 = inlined_call_operand.vmem [shape: f32[32,32], index: 7, kind: input, shape index: {}]   ;;  %s3098_s8 = inlined_call_operand.vmem [shape: f32[1,32], index: 8, kind: input, shape index: {}]   ;;  %s3099_s9 = inlined_call_operand.vmem [shape: f32[32,8], index: 9, kind: input, shape index: {}]   ;;  %s3100_s10 = inlined_call_operand.vmem [shape: f32[32,8], index: 10, kind: input, shape index: {}]   ;;  %s3101_s11 = inlined_call_operand.vmem [shape: f32[1,8], index: 11, kind: input, shape index: {}]   ;;  %s3102_s12 = inlined_call_operand.vmem [shape: f32[64,8], index: 12, kind: output, shape index: {}]  }
   0x1   :  { %s2689_s23 = smov 0  }
   0x2 LB: > { %s34_s24 = sadd.s32 1, %s2611_s22  ;;  %p2049_p0 = scmp.ge.s32.totalorder %s2615_s23, 1  ;;  %s2615_s23 = sphi %s2689_s23, %s22_s23   ;;  %s2611_s22 = sphi %s2687_s22, %s3104_s22   ;;  %s2607_s21 = sphi %s2685_s21, %s3103_s21  }
   0x3   : > { %p36_p1 = scmp.ge.s32.totalorder %s34_s24, 3  ;;  %p393_p2 = scmp.lt.s32.totalorder %s2615_s23, 4 }
   0x5   : > { %s3106_s24 = smov (%p36_p1, %s34_s24), 0  ;;  %p394_p3 = pnand %p2049_p0, %p393_p2 }
   0x6   : > { %p444_p4 = scmp.lt.s32.totalorder (!%p394_p3), %s2607_s21, 2  ;;  %p2054_p5 = scmp.ne.s32.totalorder (!%p394_p3), %s2607_s21, 0 }
   0x7   : > { %397 = sbr.rel (%p394_p3) target bundleno = 1456 (0x5b0), region = 68 }
   0xe   : > { %s445_s25 = scalar_select %p444_p4, %s2607_s21, 2 }
   0xf   : > { %v2749_v26 = vld [vmem:[%s3092_s2] sm:$0xff] (!%p2054_p5)  ;;  %v2754_v27 = vld [vmem:[%s3092_s2 + $0x8] sm:$0xff] (!%p2054_p5)  ;;  %v2759_v28 = vld [vmem:[%s3092_s2 + $0x10] sm:$0xff] (!%p2054_p5)  ;;  %vm516_vm0 = vcmask (!%p2054_p5), 523264   ;;  %v2617_v31 = vmov (!%p2054_p5), 0   ;;  %vm694_vm1 = vcmask (!%p2054_p5), 130048  }
  0x10   : > { %s2134_s26 = sshll.u32 %s445_s25, 4  ;;  %s2135_s27 = sshll.u32 %s445_s25, 6  ;;  %v2448_v29 = vpack.c.bf16 (!%p2054_p5), %v2754_v27, %v2749_v26  ;;  %v2766_v30 = vld [vmem:[%s3092_s2 + $0x18] sm:$0xff] (!%p2054_p5)  ;;  %2587 = vset.pattern.permute.xlu0 (!%p2054_p5), %v2617_v31  ;;  %v2775_v33 = vld [vmem:[%s3092_s2 + $0x20] sm:$0xff] (!%p2054_p5)  ;;  %v2780_v34 = vld [vmem:[%s3092_s2 + $0x28] sm:$0xff] (!%p2054_p5)  ;;  %2588 = vset.pattern.permute.xlu1 (!%p2054_p5), %v2617_v31  ;;  %vm976_vm2 = vcmask (!%p2054_p5), 261120  }
  0x11   : > { %s451_s30 = scalar_lea.vmem %s3090_s0, %s2134_s26  ;;  %s461_s15 = scalar_lea.vmem %s3091_s1, %s2135_s27  ;;  %v2452_v32 = vpack.c.bf16 (!%p2054_p5), %v2766_v30, %v2759_v28  ;;  %v2456_v35 = vpack.c.bf16 (!%p2054_p5), %v2780_v34, %v2775_v33  ;;  %v2789_v36 = vld [vmem:[%s3092_s2 + $0x30] sm:$0xff] (!%p2054_p5)  ;;  %v2794_v37 = vld [vmem:[%s3092_s2 + $0x38] sm:$0xff] (!%p2054_p5)  ;;  %v496_v39 = vld [vmem:[%s3094_s4] sm:$0xff] (!%p2054_p5) }
  0x12   : > { %v464_v0 = vld [vmem:[%s451_s30] sm:$0xff]  ;;  %v465_v1 = vld [vmem:[%s451_s30 + $0x8] sm:$0xff]  ;;  %v2717_v8 = vld [vmem:[%s461_s15 + $0x10] sm:$0xff]  ;;  %493 = sbr.rel (%p2054_p5) target bundleno = 497 (0x1f1), region = 72  ;;  %2449 = vmatprep.subr.bf16.mxu0 (!%p2054_p5), %v2448_v29  ;;  %v2460_v38 = vpack.c.bf16 (!%p2054_p5), %v2794_v37, %v2789_v36 }
  0x13   : > { %v2713_v2 = vld [vmem:[%s461_s15] sm:$0xff]  ;;  %v466_v3 = vunpack.c.0.s8 %v464_v0  ;;  %v467_v4 = vunpack.c.1.s8 %v464_v0  ;;  %v468_v5 = vunpack.c.2.s8 %v464_v0  ;;  %v469_v6 = vunpack.c.3.s8 %v464_v0  ;;  %v2715_v7 = vld [vmem:[%s461_s15 + $0x8] sm:$0xff]  ;;  %v2719_v9 = vld [vmem:[%s461_s15 + $0x18] sm:$0xff]  ;;  %658 = vperm.xlu1 (!%p2054_p5), %2588, %v2717_v8   ;;  %2451 = vmatpush3.bf16.msra.mxu0 (!%p2054_p5), %v2448_v29 }
  0x14   : > { %v470_v10 = vunpack.c.0.s8 %v465_v1  ;;  %v471_v11 = vunpack.c.1.s8 %v465_v1  ;;  %v472_v12 = vunpack.c.2.s8 %v465_v1  ;;  %v473_v13 = vunpack.c.3.s8 %v465_v1  ;;  %v2721_v14 = vld [vmem:[%s461_s15 + $0x20] sm:$0xff]  ;;  %v2723_v15 = vld [vmem:[%s461_s15 + $0x28] sm:$0xff]  ;;  %v2725_v16 = vld [vmem:[%s461_s15 + $0x30] sm:$0xff]  ;;  %648 = vperm.xlu0 (!%p2054_p5), %2587, %v2713_v2   ;;  %2453 = vmatprep.subr.bf16.mxu0 (!%p2054_p5), %v2452_v32 }
  0x15   : > { %v2727_v17 = vcvt.s32.f32 %v466_v3  ;;  %v2729_v18 = vcvt.s32.f32 %v467_v4  ;;  %v2731_v19 = vcvt.s32.f32 %v468_v5  ;;  %v2733_v20 = vcvt.s32.f32 %v469_v6  ;;  %v2735_v21 = vld [vmem:[%s461_s15 + $0x38] sm:$0xff]  ;;  %v497_v40 = vld [vmem:[%s3094_s4 + $0x8] sm:$0xff] (!%p2054_p5)  ;;  %v494_v42 = vld [vmem:[%s3093_s3] sm:$0xff] (!%p2054_p5) }
  0x16   : > { %v2737_v22 = vcvt.s32.f32 %v470_v10  ;;  %v2739_v23 = vcvt.s32.f32 %v471_v11  ;;  %v2741_v24 = vcvt.s32.f32 %v472_v12  ;;  %v2743_v25 = vcvt.s32.f32 %v473_v13  ;;  %v495_v43 = vld [vmem:[%s3093_s3 + $0x8] sm:$0xff] (!%p2054_p5)  ;;  %v2079_v6 = vld [vmem:[%s3095_s5] ss:$0 sm:$0xff] (!%p2054_p5) }
  0x17   : > { %2268 = vmatprep.mubr.msk.f32.mxu0 (!%p2054_p5), %vm516_vm0, %v2727_v17  ;;  %663 = vperm.xlu1 (!%p2054_p5), %2588, %v2719_v9   ;;  %v2464_v41 = vpack.c.bf16 (!%p2054_p5), %v497_v40, %v496_v39  ;;  %v2468_v44 = vpack.c.bf16 (!%p2054_p5), %v495_v43, %v494_v42 }
  0x18   : > { %653 = vperm.xlu0 (!%p2054_p5), %2587, %v2715_v7   ;;  %2455 = vmatpush3.bf16.msra.mxu0 (!%p2054_p5), %v2452_v32 }
  0x19   : > { %2457 = vmatprep.subr.bf16.mxu0 %v2456_v35  ;;  %2465 = vmatprep.subr.bf16.mxu1 %v2464_v41 }
  0x1a   : > { %2467 = vmatpush3.bf16.msra.mxu1 %v2464_v41 }
  0x1b   : > { %673 = vperm.xlu1 %2588, %v2723_v15   ;;  %2469 = vmatprep.subr.bf16.mxu1 %v2468_v44 }
  0x1c   : > { %668 = vperm.xlu0 %2587, %v2721_v14   ;;  %2459 = vmatpush3.bf16.msra.mxu0 %v2456_v35 }
  0x1d   : > { %2461 = vmatprep.subr.bf16.mxu0 %v2460_v38 }
  0x1f   : > { %683 = vperm.xlu1 %2588, %v2735_v21  }
  0x20   : > { %678 = vperm.xlu0 %2587, %v2725_v16   ;;  %2463 = vmatpush3.bf16.msra.mxu0 %v2460_v38 }
  0x23   : > { %2269 = vmatmul.mubr.msk.f32.vlgmr.msra.gmra.mrb[0].mxu0 %vm516_vm0, %v2729_v18 }
  0x24   : > { %2271 = vmatprep.mubr.msk.f32.mxu0 %vm516_vm0, %v2731_v19 }
  0x27   : > { %2272 = vmatmul.mubr.msk.f32.gmra.mrb[2].mxu0 %vm516_vm0, %v2733_v20 }
  0x28   : > { %2274 = vmatprep.mubr.msk.f32.mxu0 %vm516_vm0, %v2737_v22 }
  0x2b   : > { %2275 = vmatmul.mubr.msk.f32.gmra.mrb[4].mxu0 %vm516_vm0, %v2739_v23 }
  0x2c   : > { %2277 = vmatprep.mubr.msk.f32.mxu0 %vm516_vm0, %v2741_v24 }
  0x2f   : > { %2278 = vmatmul.mubr.msk.f32.gmra.mrb[6].mxu0 %vm516_vm0, %v2743_v25 }
  0x92   : > { %v659_v46 = vpop.permute.xlu1 %658 }
  0x93   : > { %v649_v45 = vpop.permute.xlu0 %648 }
  0x96   : > { %v664_v50 = vpop.permute.xlu1 %663 }
  0x97   : > { %v654_v48 = vpop.permute.xlu0 %653 }
  0x9a   : > { %v674_v58 = vpop.permute.xlu1 %673 }
  0x9b   : > { %v669_v56 = vpop.permute.xlu0 %668 }
  0x9e   : > { %v684_v3 = vpop.permute.xlu1 %683 }
  0x9f   : > { %v679_v0 = vpop.permute.xlu0 %678 }
  0xf6   : > { %v2270_v47 = vpop.f32.mrb[0].mxu0 }
  0xf7   : > { %v607_v49 = vpop.f32.mrb[1].mxu0  ;;  %v687_v52 = vmul.f32 %v2270_v47, %v654_v48 }
  0xf8   : > { %v686_v51 = vmul.f32 %v649_v45, %v607_v49 }
  0xfa   : > { %v2273_v53 = vpop.f32.mrb[2].mxu0  ;;  %2284 = vmatprep.mubr.msk.f32.mxu1 %vm694_vm1, %v686_v51 }
  0xfb   : > { %v617_v54 = vpop.f32.mrb[3].mxu0  ;;  %2285 = vmatmul.mubr.msk.f32.vlgmr.msra.gmra.mrb[0].mxu1 %vm694_vm1, %v687_v52  ;;  %v689_v57 = vmul.f32 %v2273_v53, %v664_v50 }
  0xfc   : > { %v688_v55 = vmul.f32 %v659_v46, %v617_v54  ;;  %2471 = vmatpush3.bf16.msra.mxu1 %v2468_v44 }
  0xfe   : > { %v2276_v59 = vpop.f32.mrb[4].mxu0  ;;  %2287 = vmatprep.mubr.msk.f32.mxu1 %vm694_vm1, %v688_v55 }
  0xff   : > { %v627_v60 = vpop.f32.mrb[5].mxu0  ;;  %2288 = vmatmul.mubr.msk.f32.gmra.mrb[2].mxu1 %vm694_vm1, %v689_v57  ;;  %v691_v62 = vmul.f32 %v2276_v59, %v674_v58 }
 0x100   : > { %v690_v61 = vmul.f32 %v669_v56, %v627_v60 }
 0x102   : > { %v2279_v63 = vpop.f32.mrb[6].mxu0  ;;  %2290 = vmatprep.mubr.msk.f32.mxu1 %vm694_vm1, %v690_v61 }
 0x103   : > { %v637_v1 = vpop.f32.mrb[7].mxu0  ;;  %2291 = vmatmul.mubr.msk.f32.gmra.mrb[4].mxu1 %vm694_vm1, %v691_v62  ;;  %v693_v5 = vmul.f32 %v2279_v63, %v684_v3 }
 0x104   : > { %v692_v4 = vmul.f32 %v679_v0, %v637_v1 }
 0x106   : > { %2293 = vmatprep.mubr.msk.f32.mxu1 %vm694_vm1, %v692_v4 }
 0x107   : > { %2294 = vmatmul.mubr.msk.f32.gmra.mrb[6].mxu1 %vm694_vm1, %v693_v5 }
 0x108   : > { %2300 = vmatprep.mubr.msk.f32.mxu1 %vm694_vm1, %v2749_v26 }
 0x10b   : > { %2301 = vmatmul.mubr.msk.f32.vlgmr.msra.gmra.mrb[0].mxu1 %vm694_vm1, %v2754_v27 }
 0x10c   : > { %2303 = vmatprep.mubr.msk.f32.mxu1 %vm694_vm1, %v2759_v28 }
 0x10f   : > { %2304 = vmatmul.mubr.msk.f32.gmra.mrb[2].mxu1 %vm694_vm1, %v2766_v30 }
 0x110   : > { %2306 = vmatprep.mubr.msk.f32.mxu1 %vm694_vm1, %v2775_v33 }
 0x113   : > { %2307 = vmatmul.mubr.msk.f32.gmra.mrb[4].mxu1 %vm694_vm1, %v2780_v34 }
 0x114   : > { %2309 = vmatprep.mubr.msk.f32.mxu1 %vm694_vm1, %v2789_v36 }
 0x117   : > { %2310 = vmatmul.mubr.msk.f32.gmra.mrb[6].mxu1 %vm694_vm1, %v2794_v37 }
 0x1de   : > { %v2302_v10 = vpop.f32.mrb[0].mxu1 }
 0x1df   : > { %v960_v11 = vadd.f32 %v2302_v10, %v2079_v6  ;;  %v914_v12 = vpop.f32.mrb[1].mxu1 }
 0x1e0   : > { %v959_v13 = vadd.f32 %v2079_v6, %v914_v12 }
 0x1e1   : > { %v968_v26 = vmax.f32 %v960_v11, 0.0 }
 0x1e2   : > { %v967_v27 = vmax.f32 %v959_v13, 0.0  ;;  %v2305_v28 = vpop.f32.mrb[2].mxu1 }
 0x1e3   : > { %978 = vst.msk [vmem:[#allocation2 + $0x8] sm:$0xff] %vm976_vm2, %v968_v26  ;;  %v962_v29 = vadd.f32 %v2305_v28, %v2079_v6  ;;  %v924_v30 = vpop.f32.mrb[3].mxu1 }
 0x1e4   : > { %977 = vst.msk [vmem:[#allocation2] sm:$0xff] %vm976_vm2, %v967_v27  ;;  %v961_v31 = vadd.f32 %v2079_v6, %v924_v30 }
 0x1e5   : > { %v970_v32 = vmax.f32 %v962_v29, 0.0 }
 0x1e6   : > { %v969_v33 = vmax.f32 %v961_v31, 0.0  ;;  %v2308_v34 = vpop.f32.mrb[4].mxu1 }
 0x1e7   : > { %980 = vst.msk [vmem:[#allocation2 + $0x18] sm:$0xff] %vm976_vm2, %v970_v32  ;;  %v964_v35 = vadd.f32 %v2308_v34, %v2079_v6  ;;  %v934_v36 = vpop.f32.mrb[5].mxu1 }
 0x1e8   : > { %979 = vst.msk [vmem:[#allocation2 + $0x10] sm:$0xff] %vm976_vm2, %v969_v33  ;;  %v963_v37 = vadd.f32 %v2079_v6, %v934_v36 }
 0x1e9   : > { %v972_v38 = vmax.f32 %v964_v35, 0.0 }
 0x1ea   : > { %v971_v39 = vmax.f32 %v963_v37, 0.0  ;;  %v2311_v40 = vpop.f32.mrb[6].mxu1 }
 0x1eb   : > { %982 = vst.msk [vmem:[#allocation2 + $0x28] sm:$0xff] %vm976_vm2, %v972_v38  ;;  %v966_v41 = vadd.f32 %v2311_v40, %v2079_v6  ;;  %v944_v42 = vpop.f32.mrb[7].mxu1 }
 0x1ec   : > { %981 = vst.msk [vmem:[#allocation2 + $0x20] sm:$0xff] %vm976_vm2, %v971_v39  ;;  %v965_v43 = vadd.f32 %v2079_v6, %v944_v42 }
 0x1ed   : > { %v974_v44 = vmax.f32 %v966_v41, 0.0 }
 0x1ee   : > { %v973_v45 = vmax.f32 %v965_v43, 0.0 }
 0x1ef   : > { %984 = vst.msk [vmem:[#allocation2 + $0x38] sm:$0xff] %vm976_vm2, %v974_v44 }
 0x1f0   : > { %983 = vst.msk [vmem:[#allocation2 + $0x30] sm:$0xff] %vm976_vm2, %v973_v45 }
 0x1f1 PF: > { %p2080_p6 = scmp.ne.s32.totalorder %s2607_s21, 1 }
 0x1f2   : > { %v2866_v46 = vld [vmem:[#allocation2] sm:$0xff] (!%p2080_p6)  ;;  %v2868_v47 = vld [vmem:[#allocation2 + $0x8] sm:$0xff] (!%p2080_p6)  ;;  %v2870_v48 = vld [vmem:[#allocation2 + $0x10] sm:$0xff] (!%p2080_p6)  ;;  %vm1015_vm3 = vcmask (!%p2080_p6), 523264   ;;  %v2618_v51 = vmov (!%p2080_p6), 0   ;;  %vm1193_vm4 = vcmask (!%p2080_p6), 261120  }
 0x1f3   : > { %988 = sbr.rel (%p2080_p6) target bundleno = 979 (0x3d3), region = 76  ;;  %v2472_v49 = vpack.c.bf16 (!%p2080_p6), %v2868_v47, %v2866_v46  ;;  %v2874_v50 = vld [vmem:[#allocation2 + $0x18] sm:$0xff] (!%p2080_p6)  ;;  %2328 = vmatprep.mubr.msk.f32.mxu0 (!%p2080_p6), %vm1015_vm3, %v2727_v17  ;;  %2590 = vset.pattern.permute.xlu1 (!%p2080_p6), %v2618_v51  ;;  %v2880_v53 = vld [vmem:[#allocation2 + $0x20] sm:$0xff] (!%p2080_p6)  ;;  %v2882_v54 = vld [vmem:[#allocation2 + $0x28] sm:$0xff] (!%p2080_p6) }
 0x1f4   : > { %v2476_v52 = vpack.c.bf16 (!%p2080_p6), %v2874_v50, %v2870_v48  ;;  %1167 = vperm.xlu1 (!%p2080_p6), %2590, %v2721_v14   ;;  %2589 = vset.pattern.permute.xlu0 (!%p2080_p6), %v2618_v51  ;;  %v2480_v55 = vpack.c.bf16 (!%p2080_p6), %v2882_v54, %v2880_v53  ;;  %v993_v59 = vld [vmem:[%s3097_s7] sm:$0xff] (!%p2080_p6)  ;;  %v994_v60 = vld [vmem:[%s3097_s7 + $0x8] sm:$0xff] (!%p2080_p6)  ;;  %v995_v62 = vld [vmem:[%s3097_s7 + $0x10] sm:$0xff] (!%p2080_p6) }
 0x1f5   : > { %2473 = vmatprep.subr.bf16.mxu0 (!%p2080_p6), %v2472_v49  ;;  %1157 = vperm.xlu0 (!%p2080_p6), %2589, %v2717_v8   ;;  %v2488_v61 = vpack.c.bf16 (!%p2080_p6), %v994_v60, %v993_v59  ;;  %v996_v63 = vld [vmem:[%s3097_s7 + $0x18] sm:$0xff] (!%p2080_p6)  ;;  %v989_v1 = vld [vmem:[%s3096_s6] sm:$0xff] (!%p2080_p6)  ;;  %v990_v3 = vld [vmem:[%s3096_s6 + $0x8] sm:$0xff] (!%p2080_p6) }
 0x1f6   : > { %2475 = vmatpush3.bf16.msra.mxu0 (!%p2080_p6), %v2472_v49  ;;  %v2890_v57 = vld [vmem:[#allocation2 + $0x38] sm:$0xff] (!%p2080_p6)  ;;  %v2492_v0 = vpack.c.bf16 (!%p2080_p6), %v996_v63, %v995_v62  ;;  %v2496_v4 = vpack.c.bf16 (!%p2080_p6), %v990_v3, %v989_v1  ;;  %v991_v33 = vld [vmem:[%s3096_s6 + $0x10] sm:$0xff] (!%p2080_p6) }
 0x1f7   : > { %2477 = vmatprep.subr.bf16.mxu0 (!%p2080_p6), %v2476_v52  ;;  %v2888_v56 = vld [vmem:[#allocation2 + $0x30] sm:$0xff] (!%p2080_p6)  ;;  %2544 = vmatprep.subr.bf16.mxu1 (!%p2080_p6), %v2488_v61  ;;  %v992_v34 = vld [vmem:[%s3096_s6 + $0x18] sm:$0xff] (!%p2080_p6) }
 0x1f8   : > { %1172 = vperm.xlu1 (!%p2080_p6), %2590, %v2723_v15   ;;  %v2484_v58 = vpack.c.bf16 (!%p2080_p6), %v2890_v57, %v2888_v56  ;;  %2546 = vmatpush3.bf16.msra.mxu1 (!%p2080_p6), %v2488_v61  ;;  %v2500_v38 = vpack.c.bf16 (!%p2080_p6), %v992_v34, %v991_v33 }
 0x1f9   : > { %1162 = vperm.xlu0 (!%p2080_p6), %2589, %v2719_v9   ;;  %2545 = vmatprep.subr.bf16.mxu1 (!%p2080_p6), %v2492_v0 }
 0x1fa   : > { %2479 = vmatpush3.bf16.msra.mxu0 %v2476_v52 }
 0x1fb   : > { %2481 = vmatprep.subr.bf16.mxu0 %v2480_v55 }
 0x1fc   : > { %1182 = vperm.xlu1 %2590, %v2735_v21   ;;  %2547 = vmatpush3.bf16.msra.mxu1 %v2492_v0 }
 0x1fd   : > { %1177 = vperm.xlu0 %2589, %v2725_v16   ;;  %2497 = vmatprep.subr.bf16.mxu1 %v2496_v4 }
 0x1fe   : > { %2483 = vmatpush3.bf16.msra.mxu0 %v2480_v55 }
 0x1ff   : > { %2485 = vmatprep.subr.bf16.mxu0 %v2484_v58 }
 0x200   : > { %1152 = vperm.xlu1 %2590, %v2715_v7  }
 0x201   : > { %1147 = vperm.xlu0 %2589, %v2713_v2  }
 0x202   : > { %2487 = vmatpush3.bf16.msra.mxu0 %v2484_v58 }
 0x203   : > { %2489 = vmatprep.subr.bf16.mxu0 %v2488_v61 }
 0x205   : > { %2329 = vmatmul.mubr.msk.f32.vlgmr.msra.gmra.mrb[0].mxu0 %vm1015_vm3, %v2729_v18 }
 0x206   : > { %2331 = vmatprep.mubr.msk.f32.mxu0 %vm1015_vm3, %v2731_v19  ;;  %2491 = vmatpush3.bf16.msra.mxu0 %v2488_v61 }
 0x207   : > { %2493 = vmatprep.subr.bf16.mxu0 %v2492_v0 }
 0x209   : > { %2332 = vmatmul.mubr.msk.f32.gmra.mrb[2].mxu0 %vm1015_vm3, %v2733_v20 }
 0x20a   : > { %2334 = vmatprep.mubr.msk.f32.mxu0 %vm1015_vm3, %v2737_v22  ;;  %2495 = vmatpush3.bf16.msra.mxu0 %v2492_v0 }
 0x20d   : > { %2335 = vmatmul.mubr.msk.f32.gmra.mrb[4].mxu0 %vm1015_vm3, %v2739_v23 }
 0x20e   : > { %2337 = vmatprep.mubr.msk.f32.mxu0 %vm1015_vm3, %v2741_v24 }
 0x211   : > { %2338 = vmatmul.mubr.msk.f32.gmra.mrb[6].mxu0 %vm1015_vm3, %v2743_v25 }
 0x273   : > { %v1168_v6 = vpop.permute.xlu1 %1167 }
 0x274   : > { %v1158_v5 = vpop.permute.xlu0 %1157 }
 0x277   : > { %v1173_v11 = vpop.permute.xlu1 %1172 }
 0x278   : > { %v1163_v10 = vpop.permute.xlu0 %1162 }
 0x27b   : > { %v1183_v13 = vpop.permute.xlu1 %1182 }
 0x27c   : > { %v1178_v12 = vpop.permute.xlu0 %1177 }
 0x27f   : > { %v1153_v27 = vpop.permute.xlu1 %1152 }
 0x280   : > { %v1148_v26 = vpop.permute.xlu0 %1147 }
 0x2d8   : > { %v2330_v28 = vpop.f32.mrb[0].mxu0 }
 0x2d9   : > { %v1106_v29 = vpop.f32.mrb[1].mxu0  ;;  %v1186_v31 = vmul.f32 %v2330_v28, %v1153_v27 }
 0x2da   : > { %v1185_v30 = vmul.f32 %v1148_v26, %v1106_v29 }
 0x2dc   : > { %v2333_v32 = vpop.f32.mrb[2].mxu0  ;;  %2348 = vmatprep.mubr.msk.f32.mxu0 %vm1193_vm4, %v1185_v30 }
 0x2dd   : > { %v1116_v35 = vpop.f32.mrb[3].mxu0  ;;  %2349 = vmatmul.mubr.msk.f32.vlgmr.msra.gmra.mrb[8].mxu0 %vm1193_vm4, %v1186_v31  ;;  %v1188_v37 = vmul.f32 %v2333_v32, %v1163_v10 }
 0x2de   : > { %v1187_v36 = vmul.f32 %v1158_v5, %v1116_v35 }
 0x2e0   : > { %v2336_v39 = vpop.f32.mrb[4].mxu0  ;;  %2351 = vmatprep.mubr.msk.f32.mxu1 %vm1193_vm4, %v1187_v36 }
 0x2e1   : > { %v1126_v40 = vpop.f32.mrb[5].mxu0  ;;  %2352 = vmatmul.mubr.msk.f32.vlgmr.msra.gmra.mrb[0].mxu1 %vm1193_vm4, %v1188_v37  ;;  %v1190_v42 = vmul.f32 %v2336_v39, %v1173_v11 }
 0x2e2   : > { %v1189_v41 = vmul.f32 %v1168_v6, %v1126_v40  ;;  %2499 = vmatpush3.bf16.msra.mxu1 %v2496_v4 }
 0x2e3   : > { %2501 = vmatprep.subr.bf16.mxu1 %v2500_v38 }
 0x2e4   : > { %v2339_v43 = vpop.f32.mrb[6].mxu0  ;;  %2354 = vmatprep.mubr.msk.f32.mxu1 %vm1193_vm4, %v1189_v41 }
 0x2e5   : > { %v1136_v44 = vpop.f32.mrb[7].mxu0  ;;  %2355 = vmatmul.mubr.msk.f32.gmra.mrb[2].mxu1 %vm1193_vm4, %v1190_v42  ;;  %v1192_v49 = vmul.f32 %v2339_v43, %v1183_v13 }
 0x2e6   : > { %v1191_v45 = vmul.f32 %v1178_v12, %v1136_v44  ;;  %2503 = vmatpush3.bf16.msra.mxu1 %v2500_v38 }
 0x2e8   : > { %2357 = vmatprep.mubr.msk.f32.mxu1 %vm1193_vm4, %v1191_v45 }
 0x2e9   : > { %2358 = vmatmul.mubr.msk.f32.gmra.mrb[4].mxu1 %vm1193_vm4, %v1192_v49 }
 0x2ea   : > { %2368 = vmatprep.mubr.msk.f32.mxu1 %vm1193_vm4, %v2866_v46 }
 0x2ed   : > { %2369 = vmatmul.mubr.msk.f32.vlgmr.msra.gmra.mrb[6].mxu1 %vm1193_vm4, %v2868_v47 }
 0x2ee   : > { %2371 = vmatprep.mubr.msk.f32.mxu1 %vm1193_vm4, %v2870_v48  ;;  %v2105_v48 = vld [vmem:[%s3098_s8] ss:$0 sm:$0xff] }
 0x2f1   : > { %2372 = vmatmul.mubr.msk.f32.gmra.mrb[0].mxu1 %vm1193_vm4, %v2874_v50 }
 0x2f2   : > { %2374 = vmatprep.mubr.msk.f32.mxu1 %vm1193_vm4, %v2880_v53 }
 0x2f5   : > { %2375 = vmatmul.mubr.msk.f32.gmra.mrb[2].mxu1 %vm1193_vm4, %v2882_v54 }
 0x2f6   : > { %2377 = vmatprep.mubr.msk.f32.mxu1 %vm1193_vm4, %v2888_v56 }
 0x2f9   : > { %2378 = vmatmul.mubr.msk.f32.gmra.mrb[4].mxu1 %vm1193_vm4, %v2890_v57 }
 0x3b0   : > { %v2350_v46 = vpop.f32.mrb[8].mxu0 }
 0x3b1   : > { %v1284_v47 = vpop.f32.mrb[9].mxu0 }
 0x3c0   : > { %v2370_v51 = vpop.f32.mrb[6].mxu1 }
 0x3c1   : > { %v1419_v50 = vadd.f32 %v2370_v51, %v2350_v46  ;;  %v1413_v52 = vpop.f32.mrb[7].mxu1 }
 0x3c2   : > { %v1414_v55 = vadd.f32 %v1413_v52, %v1284_v47 }
 0x3c3   : > { %v1459_v53 = vadd.f32 %v2105_v48, %v1419_v50 }
 0x3c4   : > { %v1458_v58 = vadd.f32 %v2105_v48, %v1414_v55  ;;  %v2373_v59 = vpop.f32.mrb[0].mxu1 }
 0x3c5   : > { %v1467_v54 = vmax.f32 %v1459_v53, 0.0  ;;  %v1461_v60 = vadd.f32 %v2373_v59, %v2105_v48  ;;  %v1423_v61 = vpop.f32.mrb[1].mxu1 }
 0x3c6   : > { %v1466_v56 = vmax.f32 %v1458_v58, 0.0  ;;  %v1460_v62 = vadd.f32 %v2105_v48, %v1423_v61 }
 0x3c7   : > { %1476 = vst.msk [vmem:[#allocation3 + $0x8] sm:$0xff] %vm1193_vm4, %v1467_v54  ;;  %v1469_v57 = vmax.f32 %v1461_v60, 0.0 }
 0x3c8   : > { %1475 = vst.msk [vmem:[#allocation3] sm:$0xff] %vm1193_vm4, %v1466_v56  ;;  %v1468_v63 = vmax.f32 %v1460_v62, 0.0  ;;  %v2376_v0 = vpop.f32.mrb[2].mxu1 }
 0x3c9   : > { %1478 = vst.msk [vmem:[#allocation3 + $0x18] sm:$0xff] %vm1193_vm4, %v1469_v57  ;;  %v1463_v1 = vadd.f32 %v2376_v0, %v2105_v48  ;;  %v1433_v3 = vpop.f32.mrb[3].mxu1 }
 0x3ca   : > { %1477 = vst.msk [vmem:[#allocation3 + $0x10] sm:$0xff] %vm1193_vm4, %v1468_v63  ;;  %v1462_v4 = vadd.f32 %v2105_v48, %v1433_v3 }
 0x3cb   : > { %v1471_v5 = vmax.f32 %v1463_v1, 0.0 }
 0x3cc   : > { %v1470_v6 = vmax.f32 %v1462_v4, 0.0  ;;  %v2379_v10 = vpop.f32.mrb[4].mxu1 }
 0x3cd   : > { %1480 = vst.msk [vmem:[#allocation3 + $0x28] sm:$0xff] %vm1193_vm4, %v1471_v5  ;;  %v1465_v11 = vadd.f32 %v2379_v10, %v2105_v48  ;;  %v1443_v12 = vpop.f32.mrb[5].mxu1 }
 0x3ce   : > { %1479 = vst.msk [vmem:[#allocation3 + $0x20] sm:$0xff] %vm1193_vm4, %v1470_v6  ;;  %v1464_v13 = vadd.f32 %v2105_v48, %v1443_v12 }
 0x3cf   : > { %v1473_v26 = vmax.f32 %v1465_v11, 0.0 }
 0x3d0   : > { %v1472_v27 = vmax.f32 %v1464_v13, 0.0 }
 0x3d1   : > { %1482 = vst.msk [vmem:[#allocation3 + $0x38] sm:$0xff] %vm1193_vm4, %v1473_v26 }
 0x3d2   : > { %1481 = vst.msk [vmem:[#allocation3 + $0x30] sm:$0xff] %vm1193_vm4, %v1472_v27 }
 0x3d3 PF: > { %p2106_p7 = scmp.ne.s32.totalorder %s2607_s21, 2 }
 0x3d4   : > { %v1491_v28 = vld [vmem:[%s3100_s10] sm:$0xff] (!%p2106_p7)  ;;  %v1492_v29 = vld [vmem:[%s3100_s10 + $0x8] sm:$0xff] (!%p2106_p7)  ;;  %v1493_v30 = vld [vmem:[%s3100_s10 + $0x10] sm:$0xff] (!%p2106_p7)  ;;  %vm1513_vm5 = vcmask (!%p2106_p7), 261120   ;;  %vm1643_vm6 = vcmask (!%p2106_p7), 523264   ;;  %v2619_v47 = vmov (!%p2106_p7), 0  }
 0x3d5   : > { %1486 = sbr.rel (%p2106_p7) target bundleno = 1456 (0x5b0), region = 80  ;;  %v2504_v31 = vpack.c.bf16 (!%p2106_p7), %v1492_v29, %v1491_v28  ;;  %v1494_v32 = vld [vmem:[%s3100_s10 + $0x18] sm:$0xff] (!%p2106_p7)  ;;  %v1496_v33 = vld [vmem:[#allocation3] sm:$0xff] (!%p2106_p7)  ;;  %v1497_v35 = vld [vmem:[#allocation3 + $0x8] sm:$0xff] (!%p2106_p7)  ;;  %2416 = vmatprep.mubr.msk.f32.mxu1 (!%p2106_p7), %vm1643_vm6, %v2727_v17  ;;  %2592 = vset.pattern.permute.xlu1 (!%p2106_p7), %v2619_v47  ;;  %vm1965_vm7 = vcmask (!%p2106_p7), 64512  }
 0x3d6   : > { %v2508_v34 = vpack.c.bf16 (!%p2106_p7), %v1494_v32, %v1493_v30  ;;  %2388 = vmatprep.mubr.msk.f32.mxu0 (!%p2106_p7), %vm1513_vm5, %v1496_v33  ;;  %v1498_v36 = vld [vmem:[#allocation3 + $0x10] sm:$0xff] (!%p2106_p7)  ;;  %v1499_v37 = vld [vmem:[#allocation3 + $0x18] sm:$0xff] (!%p2106_p7)  ;;  %v1500_v38 = vld [vmem:[#allocation3 + $0x20] sm:$0xff] (!%p2106_p7)  ;;  %2591 = vset.pattern.permute.xlu0 (!%p2106_p7), %v2619_v47 }
 0x3d7   : > { %2505 = vmatprep.subr.bf16.mxu0 (!%p2106_p7), %v2504_v31  ;;  %v1501_v39 = vld [vmem:[#allocation3 + $0x28] sm:$0xff] (!%p2106_p7)  ;;  %v1487_v42 = vld [vmem:[%s3099_s9] sm:$0xff] (!%p2106_p7)  ;;  %v1489_v45 = vld [vmem:[%s3099_s9 + $0x10] sm:$0xff] (!%p2106_p7)  ;;  %1785 = vperm.xlu1 (!%p2106_p7), %2592, %v2717_v8  }
 0x3d8   : > { %2507 = vmatpush3.bf16.msra.mxu0 (!%p2106_p7), %v2504_v31  ;;  %v2996_v41 = vld [vmem:[#allocation3 + $0x38] sm:$0xff] (!%p2106_p7)  ;;  %v1488_v43 = vld [vmem:[%s3099_s9 + $0x8] sm:$0xff] (!%p2106_p7)  ;;  %1775 = vperm.xlu0 (!%p2106_p7), %2591, %v2713_v2   ;;  %v2131_v61 = vld [vmem:[%s3101_s11] ss:$0 sm:$0xff] (!%p2106_p7) }
 0x3d9   : > { %2509 = vmatprep.subr.bf16.mxu0 (!%p2106_p7), %v2508_v34  ;;  %v2991_v40 = vld [vmem:[#allocation3 + $0x30] sm:$0xff] (!%p2106_p7)  ;;  %v2528_v44 = vpack.c.bf16 (!%p2106_p7), %v1488_v43, %v1487_v42  ;;  %v1490_v49 = vld [vmem:[%s3099_s9 + $0x18] sm:$0xff] (!%p2106_p7) }
 0x3da   : > { %v2532_v46 = vpack.c.bf16 (!%p2106_p7), %v1490_v49, %v1489_v45 }
 0x3db   : > { %1790 = vperm.xlu1 (!%p2106_p7), %2592, %v2719_v9  }
 0x3dc   : > { %2511 = vmatpush3.bf16.msra.mxu0 %v2508_v34  ;;  %1780 = vperm.xlu0 %2591, %v2715_v7  }
 0x3dd   : > { %2529 = vmatprep.subr.bf16.mxu0 %v2528_v44 }
 0x3df   : > { %2389 = vmatmul.mubr.msk.f32.vlgmr.msra.gmra.mrb[0].mxu0 %vm1513_vm5, %v1497_v35  ;;  %1800 = vperm.xlu1 %2592, %v2723_v15  }
 0x3e0   : > { %2391 = vmatprep.mubr.msk.f32.mxu0 %vm1513_vm5, %v1498_v36  ;;  %2531 = vmatpush3.bf16.msra.mxu0 %v2528_v44 }
 0x3e1   : > { %2533 = vmatprep.subr.bf16.mxu0 %v2532_v46  ;;  %1795 = vperm.xlu0 %2591, %v2721_v14  }
 0x3e3   : > { %2392 = vmatmul.mubr.msk.f32.gmra.mrb[2].mxu0 %vm1513_vm5, %v1499_v37  ;;  %1810 = vperm.xlu1 %2592, %v2735_v21  }
 0x3e4   : > { %2394 = vmatprep.mubr.msk.f32.mxu0 %vm1513_vm5, %v1500_v38  ;;  %2535 = vmatpush3.bf16.msra.mxu0 %v2532_v46 }
 0x3e5   : > { %1805 = vperm.xlu0 %2591, %v2725_v16  }
 0x3e7   : > { %2395 = vmatmul.mubr.msk.f32.gmra.mrb[4].mxu0 %vm1513_vm5, %v1501_v39 }
 0x3e8   : > { %2397 = vmatprep.mubr.msk.f32.mxu0 %vm1513_vm5, %v2991_v40 }
 0x3eb   : > { %2398 = vmatmul.mubr.msk.f32.gmra.mrb[6].mxu0 %vm1513_vm5, %v2996_v41 }
 0x3ec   : > { %2436 = vmatprep.mubr.msk.f32.mxu0 %vm1513_vm5, %v1496_v33 }
 0x3ef   : > { %2437 = vmatmul.mubr.msk.f32.vlgmr.msra.gmra.mrb[8].mxu0 %vm1513_vm5, %v1497_v35 }
 0x3f0   : > { %2439 = vmatprep.mubr.msk.f32.mxu0 %vm1513_vm5, %v1498_v36 }
 0x3f3   : > { %2440 = vmatmul.mubr.msk.f32.gmra.mrb[10].mxu0 %vm1513_vm5, %v1499_v37 }
 0x3f4   : > { %2442 = vmatprep.mubr.msk.f32.mxu0 %vm1513_vm5, %v1500_v38 }
 0x3f7   : > { %2443 = vmatmul.mubr.msk.f32.gmra.mrb[12].mxu0 %vm1513_vm5, %v1501_v39 }
 0x457   : > { %v1776_v53 = vpop.permute.xlu0 %1775 }
 0x45b   : > { %v1781_v58 = vpop.permute.xlu0 %1780 }
 0x460   : > { %v1796_v12 = vpop.permute.xlu0 %1795 }
 0x464   : > { %v1806_v37 = vpop.permute.xlu0 %1805 }
 0x4b2   : > { %v2390_v17 = vpop.f32.mrb[0].mxu0 }
 0x4b3   : > { %v1604_v48 = vpop.f32.mrb[1].mxu0 }
 0x4b4   : > { %v2512_v51 = vpack.c.bf16 %v2390_v17, %v1604_v48 }
 0x4b6   : > { %v2393_v50 = vpop.f32.mrb[2].mxu0  ;;  %2513 = vmatprep.subr.bf16.mxu1 %v2512_v51 }
 0x4b7   : > { %v1614_v8 = vpop.f32.mrb[3].mxu0  ;;  %2515 = vmatpush3.bf16.msra.mxu1 %v2512_v51 }
 0x4b8   : > { %v2516_v2 = vpack.c.bf16 %v2393_v50, %v1614_v8 }
 0x4ba   : > { %v2396_v52 = vpop.f32.mrb[4].mxu0  ;;  %2517 = vmatprep.subr.bf16.mxu1 %v2516_v2 }
 0x4bb   : > { %v1624_v9 = vpop.f32.mrb[5].mxu0  ;;  %2519 = vmatpush3.bf16.msra.mxu1 %v2516_v2 }
 0x4bc   : > { %v2520_v7 = vpack.c.bf16 %v2396_v52, %v1624_v9 }
 0x4be   : > { %v2399_v15 = vpop.f32.mrb[6].mxu0  ;;  %2521 = vmatprep.subr.bf16.mxu1 %v2520_v7 }
 0x4bf   : > { %v1634_v14 = vpop.f32.mrb[7].mxu0  ;;  %2523 = vmatpush3.bf16.msra.mxu1 %v2520_v7 }
 0x4c0   : > { %v2524_v21 = vpack.c.bf16 %v2399_v15, %v1634_v14 }
 0x4c2   : > { %2525 = vmatprep.subr.bf16.mxu1 %v2524_v21  ;;  %v2438_v16 = vpop.f32.mrb[8].mxu0 }
 0x4c3   : > { %2527 = vmatpush3.bf16.msra.mxu1 %v2524_v21 }
 0x4c4   : > { %2556 = vmatprep.subr.bf16.mxu1 %v2528_v44 }
 0x4c6   : > { %2417 = vmatmul.mubr.msk.f32.vlgmr.msra.gmra.mrb[0].mxu1 %vm1643_vm6, %v2729_v18  ;;  %v1911_v18 = vpop.f32.mrb[9].mxu0 }
 0x4c7   : > { %2558 = vmatpush3.bf16.msra.mxu1 %v2528_v44  ;;  %2419 = vmatprep.mubr.msk.f32.mxu1 %vm1643_vm6, %v2731_v19  ;;  %v2441_v19 = vpop.f32.mrb[10].mxu0 }
 0x4c8   : > { %2557 = vmatprep.subr.bf16.mxu1 %v2532_v46 }
 0x4ca   : > { %2420 = vmatmul.mubr.msk.f32.gmra.mrb[2].mxu1 %vm1643_vm6, %v2733_v20  ;;  %v1921_v20 = vpop.f32.mrb[11].mxu0 }
 0x4cb   : > { %2422 = vmatprep.mubr.msk.f32.mxu1 %vm1643_vm6, %v2737_v22  ;;  %2559 = vmatpush3.bf16.msra.mxu1 %v2532_v46  ;;  %v2444_v22 = vpop.f32.mrb[12].mxu0 }
 0x4cc   : > { %v1931_v55 = vpop.f32.mrb[13].mxu0 }
 0x4ce   : > { %2423 = vmatmul.mubr.msk.f32.gmra.mrb[4].mxu1 %vm1643_vm6, %v2739_v23  ;;  %v1786_v23 = vpop.permute.xlu1 %1785 }
 0x4cf   : > { %2425 = vmatprep.mubr.msk.f32.mxu1 %vm1643_vm6, %v2741_v24 }
 0x4d2   : > { %2426 = vmatmul.mubr.msk.f32.gmra.mrb[6].mxu1 %vm1643_vm6, %v2743_v25  ;;  %v1791_v60 = vpop.permute.xlu1 %1790 }
 0x4d3   : > { %2445 = vmatprep.mubr.msk.f32.mxu1 %vm1513_vm5, %v2991_v40 }
 0x4d6   : > { %2446 = vmatmul.mubr.msk.f32.vlgmr.msra.gmra.mrb[8].mxu1 %vm1513_vm5, %v2996_v41  ;;  %v1801_v6 = vpop.permute.xlu1 %1800 }
 0x4da   : > { %v1811_v35 = vpop.permute.xlu1 %1810 }
 0x599   : > { %v2418_v59 = vpop.f32.mrb[0].mxu1 }
 0x59a   : > { %v1814_v24 = vmul.f32 %v2418_v59, %v1781_v58  ;;  %v1734_v54 = vpop.f32.mrb[1].mxu1 }
 0x59b   : > { %v1813_v25 = vmul.f32 %v1776_v53, %v1734_v54 }
 0x59c   : > { %v1917_v56 = vadd.f32 %v2438_v16, %v1814_v24 }
 0x59d   : > { %v1912_v62 = vadd.f32 %v1911_v18, %v1813_v25  ;;  %v2421_v57 = vpop.f32.mrb[2].mxu1 }
 0x59e   : > { %v1957_v63 = vadd.f32 %v2131_v61, %v1917_v56  ;;  %v1816_v0 = vmul.f32 %v2421_v57, %v1791_v60  ;;  %v1744_v1 = vpop.f32.mrb[3].mxu1 }
 0x59f   : > { %v1956_v3 = vadd.f32 %v2131_v61, %v1912_v62  ;;  %v1815_v4 = vmul.f32 %v1786_v23, %v1744_v1 }
 0x5a0   : > { %1967 = vst.msk [vmem:[%s3102_s12 + $0x8] sm:$0xff] %vm1965_vm7, %v1957_v63  ;;  %v1927_v5 = vadd.f32 %v2441_v19, %v1816_v0 }
 0x5a1   : > { %1966 = vst.msk [vmem:[%s3102_s12] sm:$0xff] %vm1965_vm7, %v1956_v3  ;;  %v1922_v10 = vadd.f32 %v1921_v20, %v1815_v4  ;;  %v2424_v11 = vpop.f32.mrb[4].mxu1 }
 0x5a2   : > { %v1959_v13 = vadd.f32 %v2131_v61, %v1927_v5  ;;  %v1818_v26 = vmul.f32 %v2424_v11, %v1801_v6  ;;  %v1754_v27 = vpop.f32.mrb[5].mxu1 }
 0x5a3   : > { %v1958_v28 = vadd.f32 %v2131_v61, %v1922_v10  ;;  %v1817_v29 = vmul.f32 %v1796_v12, %v1754_v27 }
 0x5a4   : > { %1969 = vst.msk [vmem:[%s3102_s12 + $0x18] sm:$0xff] %vm1965_vm7, %v1959_v13  ;;  %v1937_v30 = vadd.f32 %v2444_v22, %v1818_v26 }
 0x5a5   : > { %1968 = vst.msk [vmem:[%s3102_s12 + $0x10] sm:$0xff] %vm1965_vm7, %v1958_v28  ;;  %v1932_v31 = vadd.f32 %v1931_v55, %v1817_v29  ;;  %v2427_v32 = vpop.f32.mrb[6].mxu1 }
 0x5a6   : > { %v1961_v33 = vadd.f32 %v2131_v61, %v1937_v30  ;;  %v1764_v34 = vpop.f32.mrb[7].mxu1  ;;  %v1820_v38 = vmul.f32 %v2427_v32, %v1811_v35 }
 0x5a7   : > { %v1960_v36 = vadd.f32 %v2131_v61, %v1932_v31  ;;  %v1819_v39 = vmul.f32 %v1806_v37, %v1764_v34 }
 0x5a8   : > { %1971 = vst.msk [vmem:[%s3102_s12 + $0x28] sm:$0xff] %vm1965_vm7, %v1961_v33 }
 0x5a9   : > { %1970 = vst.msk [vmem:[%s3102_s12 + $0x20] sm:$0xff] %vm1965_vm7, %v1960_v36  ;;  %v2447_v40 = vpop.f32.mrb[8].mxu1 }
 0x5aa   : > { %v1947_v41 = vadd.f32 %v2447_v40, %v1820_v38  ;;  %v1941_v42 = vpop.f32.mrb[9].mxu1 }
 0x5ab   : > { %v1942_v43 = vadd.f32 %v1941_v42, %v1819_v39 }
 0x5ac   : > { %v1963_v44 = vadd.f32 %v2131_v61, %v1947_v41 }
 0x5ad   : > { %v1962_v45 = vadd.f32 %v2131_v61, %v1942_v43 }
 0x5ae   : > { %1973 = vst.msk [vmem:[%s3102_s12 + $0x38] sm:$0xff] %vm1965_vm7, %v1963_v44 }
 0x5af   : > { %1972 = vst.msk [vmem:[%s3102_s12 + $0x30] sm:$0xff] %vm1965_vm7, %v1962_v45 }
 0x5b0 PF: > { %s22_s23 = sadd.s32 1, %s2615_s23   ;;  %s3103_s21 = smov %s2611_s22 }
 0x5b1   : > { %p19_p8 = scmp.ge.s32.totalorder %s22_s23, 5   ;;  %s3104_s22 = smov %s3106_s24 }
 0x5b3   :  { %21 = sbr.rel (!%p19_p8) target bundleno = 2 (0x2), region = 115 }

</bundles_post_ra>
